<compile_context>
chip_gen: v6e
topology: v6e:2x2x1
jax: 0.10.0
libtpu: 0.0.40
codegen_flags: <defaults>
</compile_context>

<pallas_src>
import functools

import jax
import jax.numpy as jnp
from jax import lax
from jax.experimental import pallas as pl
from jax.experimental.pallas import tpu as pltpu


_SQRT_HALF = 0.7071067811865476


def _round_up(n, m):
    return ((n + m - 1) // m) * m


def _exact_gelu(x):
    # PyTorch nn.GELU() default is the exact erf-based GELU.
    return 0.5 * x * (1.0 + lax.erf(x * _SQRT_HALF))


def _vmem_capacity_bytes():
    try:
        return int(pltpu.get_tpu_info().vmem_capacity_bytes)
    except Exception:
        return 64 << 20  # v7x per-TensorCore VMEM: safest lower bound.


# -----------------------------------------------------------------------------
# Kernels
# -----------------------------------------------------------------------------
def _kernel_reuse_h(x_ref, w1_ref, b1_ref, w2_ref, b2_ref, o_ref, h_ref, *, cast_dtype):
    """h = gelu(x@W1 + b1) computed once per batch tile (at j == 0), reused for
    every output-column tile j.

    CORRECTNESS INVARIANT: grid axis 1 (output columns, j) must be the
    innermost, sequentially iterated axis and marked "arbitrary", so the j == 0
    step writes h_ref before later j steps of the same batch tile read it.
    """
    @pl.when(pl.program_id(1) == 0)
    def _():
        h = jnp.dot(x_ref[...].astype(cast_dtype), w1_ref[...].astype(cast_dtype),
                    preferred_element_type=jnp.float32)
        h = _exact_gelu(h + b1_ref[...].astype(jnp.float32))
        h_ref[...] = h.astype(h_ref.dtype)

    y = jnp.dot(h_ref[...].astype(cast_dtype), w2_ref[...].astype(cast_dtype),
                preferred_element_type=jnp.float32)
    o_ref[...] = (y + b2_ref[...].astype(jnp.float32)).astype(o_ref.dtype)


def _kernel_recompute_h(x_ref, w1_ref, b1_ref, w2_ref, b2_ref, o_ref, *, cast_dtype):
    """Fully independent (i, j) steps: recompute h for every output-column
    tile.  Used when the batch fits in a single tile so both grid axes can be
    'parallel' (megacore / 2 TensorCores on v7x); recomputing x@W1 + GELU is
    cheap for the typical small EmbedFC input_dim."""
    h = jnp.dot(x_ref[...].astype(cast_dtype), w1_ref[...].astype(cast_dtype),
                preferred_element_type=jnp.float32)
    h = _exact_gelu(h + b1_ref[...].astype(jnp.float32))
    y = jnp.dot(h.astype(cast_dtype), w2_ref[...].astype(cast_dtype),
                preferred_element_type=jnp.float32)
    o_ref[...] = (y + b2_ref[...].astype(jnp.float32)).astype(o_ref.dtype)


# -----------------------------------------------------------------------------
# Parameter preparation (hoisted out of the hot path)
# -----------------------------------------------------------------------------
def prepare_embedfc_params(w1_t, b1, w2_t, b2, *, use_bf16=True):
    """Pad weights to 128-lane multiples ONCE at parameter-setup time.

    w1_t: [input_dim, emb_dim] (PyTorch Linear weight, pre-transposed)
    b1:   [emb_dim] or [1, emb_dim]
    w2_t: [emb_dim, emb_dim]
    b2:   [emb_dim] or [1, emb_dim]
    Weights are stored bf16 when use_bf16 (halves HBM/VMEM traffic); biases
    stay f32 (added after the f32-accumulated matmul).
    """
    input_dim, emb_dim = w1_t.shape
    d_pad = _round_up(input_dim, 128)
    e_pad = _round_up(emb_dim, 128)
    wdt = jnp.bfloat16 if use_bf16 else jnp.float32

    w1p = jnp.pad(w1_t.astype(jnp.float32),
                  ((0, d_pad - input_dim), (0, e_pad - emb_dim))).astype(wdt)
    w2p = jnp.pad(w2_t.astype(jnp.float32),
                  ((0, e_pad - emb_dim), (0, e_pad - emb_dim))).astype(wdt)
    b1p = jnp.pad(b1.reshape(1, -1).astype(jnp.float32), ((0, 0), (0, e_pad - emb_dim)))
    b2p = jnp.pad(b2.reshape(1, -1).astype(jnp.float32), ((0, 0), (0, e_pad - emb_dim)))
    return w1p, b1p, w2p, b2p


# -----------------------------------------------------------------------------
# Forward
# -----------------------------------------------------------------------------
@functools.partial(
    jax.jit,
    static_argnames=("input_dim", "emb_dim", "block_b", "block_n", "use_bf16"))
def embed_fc_forward(x, w1p, b1p, w2p, b2p, *, input_dim, emb_dim,
                     block_b=256, block_n=512, use_bf16=True):
    """Fused  y = gelu(x @ W1 + b1) @ W2 + b2  on padded params from
    prepare_embedfc_params().  Returns [B, emb_dim] with x's dtype."""
    if x.ndim == 1:  # matches the nn.Module's x.view(-1, input_dim)
        x = x.reshape(-1, input_dim)
    orig_dtype = x.dtype
    B = x.shape[0]
    assert x.shape[1] == input_dim

    d_pad, e_pad = w1p.shape
    cast_dtype = jnp.bfloat16 if use_bf16 else jnp.float32

    # ---- tile geometry ------------------------------------------------------
    bb = max(8, _round_up(min(block_b, _round_up(B, 8)), 8))
    b_pad = _round_up(B, bb)

    x_bytes = jnp.dtype(orig_dtype).itemsize
    w_bytes = jnp.dtype(w1p.dtype).itemsize
    h_bytes = 2 if use_bf16 else 4
    out_bytes = x_bytes

    vmem_cap = _vmem_capacity_bytes()
    budget = max(vmem_cap - (8 << 20), 16 << 20)   # headroom below physical VMEM

    def plan_bytes(bn, with_scratch):
        p = (2 * bb * d_pad * x_bytes          # x tile (double-buffered)
             + 2 * d_pad * e_pad * w_bytes     # W1 (grid-invariant, double-buffered)
             + 2 * 8 * e_pad * 4               # b1 (sublane-padded)
             + 2 * e_pad * bn * w_bytes        # W2 column tile (double-buffered)
             + 2 * 8 * bn * 4                  # b2
             + 2 * bb * bn * out_bytes)        # output tile
        if with_scratch:
            p += bb * e_pad * h_bytes          # h scratch
        return p

    # Adaptive output-column tile: largest 128-multiple divisor of e_pad whose
    # plan fits the VMEM budget (keeps W2 double-buffered on v7x's 64 MiB VMEM).
    bn_target = max(128, min(_round_up(block_n, 128), e_pad))
    candidates = [c for c in range(bn_target, 127, -128) if e_pad % c == 0] or [128]
    bn = candidates[-1]
    for c in candidates:
        if plan_bytes(c, with_scratch=True) <= budget:
            bn = c
            break
    # TODO(synk): for very large input_dim (d_pad*e_pad alone near VMEM), add a
    # K-tiled W1 fallback (third grid axis accumulating into h) instead of
    # keeping W1 fully resident.

    grid_i = b_pad // bb
    grid_j = e_pad // bn

    # Variant selection (megacore utilization vs W1-matmul reuse).
    reuse_h = (grid_i > 1) and (grid_j > 1)

    # ---- pad only x per call (weight padding is hoisted) ---------------------
    xp = jnp.pad(x, ((0, b_pad - B), (0, d_pad - input_dim)))

    plan = plan_bytes(bn, with_scratch=reuse_h)
    vmem_limit = max(min(int(plan * 1.3) + (4 << 20), budget), min(32 << 20, budget))

    # W2 column tiles are re-fetched once per batch tile (index_map wraps in j).
    w2_stream = (grid_i if grid_j > 1 else 1) * e_pad * e_pad * w_bytes
    cost = pl.CostEstimate(
        flops=2 * b_pad * (d_pad * e_pad + e_pad * e_pad),
        transcendentals=b_pad * e_pad * (1 if reuse_h else grid_j),
        bytes_accessed=(b_pad * d_pad * x_bytes + d_pad * e_pad * w_bytes
                        + w2_stream + 2 * e_pad * 4 + b_pad * e_pad * out_bytes),
    )

    in_specs = [
        pl.BlockSpec((bb, d_pad), lambda i, j: (i, 0)),      # x: batch tile only
        pl.BlockSpec((d_pad, e_pad), lambda i, j: (0, 0)),   # W1: grid-invariant
        pl.BlockSpec((1, e_pad), lambda i, j: (0, 0)),       # b1: grid-invariant
        pl.BlockSpec((e_pad, bn), lambda i, j: (0, j)),      # W2: column tiles
        pl.BlockSpec((1, bn), lambda i, j: (0, j)),          # b2: column tiles
    ]
    out_spec = pl.BlockSpec((bb, bn), lambda i, j: (i, j))

    if reuse_h:
        kernel = functools.partial(_kernel_reuse_h, cast_dtype=cast_dtype)
        scratch = [pltpu.VMEM((bb, e_pad), cast_dtype)]      # h = gelu(x@W1+b1)
        semantics = ("parallel", "arbitrary")                # j must stay sequential
    else:
        kernel = functools.partial(_kernel_recompute_h, cast_dtype=cast_dtype)
        scratch = []
        semantics = ("parallel", "parallel")

    out = pl.pallas_call(
        kernel,
        out_shape=jax.ShapeDtypeStruct((b_pad, e_pad), orig_dtype),
        grid=(grid_i, grid_j),
        in_specs=in_specs,
        out_specs=out_spec,
        scratch_shapes=scratch,
        compiler_params=pltpu.CompilerParams(
            dimension_semantics=semantics,
            vmem_limit_bytes=vmem_limit,
        ),
        cost_estimate=cost,
    )(xp, w1p, b1p, w2p, b2p)

    return out[:B, :emb_dim]   # crop only; kernel already stored caller dtype


# -----------------------------------------------------------------------------
# Test utilities
# -----------------------------------------------------------------------------
def init_embedfc_params(key, input_dim, emb_dim):
    """PyTorch-Linear-style init (U[-1/sqrt(fan_in), +]); weights pre-transposed [in, out]."""
    k1, k2, k3, k4 = jax.random.split(key, 4)
    lim1 = 1.0 / jnp.sqrt(input_dim)
    lim2 = 1.0 / jnp.sqrt(emb_dim)
    w1_t = jax.random.uniform(k1, (input_dim, emb_dim), jnp.float32, -lim1, lim1)
    b1 = jax.random.uniform(k2, (1, emb_dim), jnp.float32, -lim1, lim1)
    w2_t = jax.random.uniform(k3, (emb_dim, emb_dim), jnp.float32, -lim2, lim2)
    b2 = jax.random.uniform(k4, (1, emb_dim), jnp.float32, -lim2, lim2)
    return w1_t, b1, w2_t, b2


def embed_fc_ref(x, w1_t, b1, w2_t, b2):
    if x.ndim == 1:
        x = x.reshape(-1, w1_t.shape[0])
    h = x @ w1_t + b1
    h = jax.nn.gelu(h, approximate=False)
    return h @ w2_t + b2


if __name__ == "__main__":
    key = jax.random.PRNGKey(0)
    kx, kp, kx2, kp2, kx3 = jax.random.split(key, 5)

    # ---- Test 1: default bf16-MXU path (single batch tile -> recompute variant)
    input_dim, emb_dim, batch = 16, 32, 16
    x = jax.random.normal(kx, (batch, input_dim), jnp.float32)
    w1_t, b1, w2_t, b2 = init_embedfc_params(kp, input_dim, emb_dim)
    params_bf16 = prepare_embedfc_params(w1_t, b1, w2_t, b2, use_bf16=True)

    out = embed_fc_forward(x, *params_bf16, input_dim=input_dim, emb_dim=emb_dim,
                           use_bf16=True)
    out = jax.block_until_ready(out)
    ref = embed_fc_ref(x, w1_t, b1, w2_t, b2)
    assert out.shape == (batch, emb_dim)
    assert out.dtype == x.dtype
    assert jnp.allclose(out, ref, atol=5e-2, rtol=5e-2), "bf16 path mismatch"

    # ---- Test 2: exact f32 path, multiple batch & column tiles (reuse-h variant)
    input_dim2, emb_dim2, batch2 = 16, 200, 40
    x2 = jax.random.normal(kx2, (batch2, input_dim2), jnp.float32)
    w1b, b1b, w2b, b2b = init_embedfc_params(kp2, input_dim2, emb_dim2)
    params_f32 = prepare_embedfc_params(w1b, b1b, w2b, b2b, use_bf16=False)

    out2 = embed_fc_forward(x2, *params_f32, input_dim=input_dim2, emb_dim=emb_dim2,
                            block_b=8, block_n=128, use_bf16=False)
    out2 = jax.block_until_ready(out2)
    ref2 = embed_fc_ref(x2, w1b, b1b, w2b, b2b)
    assert out2.shape == (batch2, emb_dim2)
    assert jnp.allclose(out2, ref2, atol=1e-4, rtol=1e-4), "f32 path mismatch"

    # ---- Test 3: 1-D input handling (matches nn.Module's view(-1, input_dim))
    x1d = jax.random.normal(kx3, (input_dim,), jnp.float32)
    out3 = embed_fc_forward(x1d, *params_bf16, input_dim=input_dim, emb_dim=emb_dim,
                            use_bf16=True)
    out3 = jax.block_until_ready(out3)
    ref3 = embed_fc_ref(x1d, w1_t, b1, w2_t, b2)
    assert out3.shape == (1, emb_dim)
    assert jnp.allclose(out3, ref3, atol=5e-2, rtol=5e-2), "1-D path mismatch"

    print("KERNEL_OK")
</pallas_src>

<mosaic_0001>
module attributes {stable_mosaic.version = 11 : i64} {
  func.func @_kernel_recompute_h(%arg0: i32, %arg1: i32, %arg2: memref<16x128xf32, #tpu.memory_space<vmem>>, %arg3: memref<128x128xbf16, #tpu.memory_space<vmem>>, %arg4: memref<1x128xf32, #tpu.memory_space<vmem>>, %arg5: memref<128x128xbf16, #tpu.memory_space<vmem>>, %arg6: memref<1x128xf32, #tpu.memory_space<vmem>>, %arg7: memref<16x128xf32, #tpu.memory_space<vmem>>) attributes {dimension_semantics = [#tpu.dimension_semantics<parallel>, #tpu.dimension_semantics<parallel>], iteration_bounds = array<i64: 1, 1>, scalar_prefetch = 0 : i64, scratch_operands = 0 : i64, tpu.core_type = #tpu.core_type<tc>, window_params = [{transform_indices = @transform_0, window_bounds = array<i64: 16, 128>}, {pipeline_mode = #tpu.pipeline_mode<synchronous>, transform_indices = @transform_1, window_bounds = array<i64: 128, 128>}, {pipeline_mode = #tpu.pipeline_mode<synchronous>, transform_indices = @transform_2, window_bounds = array<i64: 1, 128>}, {transform_indices = @transform_3, window_bounds = array<i64: 128, 128>}, {transform_indices = @transform_4, window_bounds = array<i64: 1, 128>}, {transform_indices = @transform_5, window_bounds = array<i64: 16, 128>}]} {
    %c0 = arith.constant 0 : index
    %c0_0 = arith.constant 0 : index
    %0 = vector.load %arg2[%c0, %c0_0] : memref<16x128xf32, #tpu.memory_space<vmem>>, vector<16x128xf32>
    %1 = arith.truncf %0 : vector<16x128xf32> to vector<16x128xbf16>
    %c0_1 = arith.constant 0 : index
    %c0_2 = arith.constant 0 : index
    %2 = vector.load %arg3[%c0_1, %c0_2] : memref<128x128xbf16, #tpu.memory_space<vmem>>, vector<128x128xbf16>
    %cst = arith.constant dense<0.000000e+00> : vector<16x128xf32>
    %3 = tpu.matmul %1, %2, %cst {dimension_numbers = #tpu.dot_dimension_numbers<[1], [0], [0], [1], [0, 0, 1, 1], [], []>} : vector<16x128xbf16>, vector<128x128xbf16>, vector<16x128xf32> -> vector<16x128xf32>
    %c0_3 = arith.constant 0 : index
    %c0_4 = arith.constant 0 : index
    %4 = vector.load %arg4[%c0_3, %c0_4] : memref<1x128xf32, #tpu.memory_space<vmem>>, vector<1x128xf32>
    %5 = vector.broadcast %4 : vector<1x128xf32> to vector<16x128xf32>
    %6 = arith.addf %3, %5 : vector<16x128xf32>
    %cst_5 = arith.constant 5.000000e-01 : f32
    %7 = vector.broadcast %cst_5 : f32 to vector<16x128xf32>
    %8 = arith.mulf %7, %6 : vector<16x128xf32>
    %cst_6 = arith.constant 0.707106769 : f32
    %9 = vector.broadcast %cst_6 : f32 to vector<16x128xf32>
    %10 = arith.mulf %6, %9 : vector<16x128xf32>
    %11 = math.erf %10 : vector<16x128xf32>
    %cst_7 = arith.constant 1.000000e+00 : f32
    %12 = vector.broadcast %cst_7 : f32 to vector<16x128xf32>
    %13 = arith.addf %12, %11 : vector<16x128xf32>
    %14 = arith.mulf %8, %13 : vector<16x128xf32>
    %15 = arith.truncf %14 : vector<16x128xf32> to vector<16x128xbf16>
    %c0_8 = arith.constant 0 : index
    %c0_9 = arith.constant 0 : index
    %16 = vector.load %arg5[%c0_8, %c0_9] : memref<128x128xbf16, #tpu.memory_space<vmem>>, vector<128x128xbf16>
    %cst_10 = arith.constant dense<0.000000e+00> : vector<16x128xf32>
    %17 = tpu.matmul %15, %16, %cst_10 {dimension_numbers = #tpu.dot_dimension_numbers<[1], [0], [0], [1], [0, 0, 1, 1], [], []>} : vector<16x128xbf16>, vector<128x128xbf16>, vector<16x128xf32> -> vector<16x128xf32>
    %c0_11 = arith.constant 0 : index
    %c0_12 = arith.constant 0 : index
    %18 = vector.load %arg6[%c0_11, %c0_12] : memref<1x128xf32, #tpu.memory_space<vmem>>, vector<1x128xf32>
    %19 = vector.broadcast %18 : vector<1x128xf32> to vector<16x128xf32>
    %20 = arith.addf %17, %19 : vector<16x128xf32>
    %c0_13 = arith.constant 0 : index
    %c0_14 = arith.constant 0 : index
    %21 = vector.load %arg7[%c0_13, %c0_14] : memref<16x128xf32, #tpu.memory_space<vmem>>, vector<16x128xf32>
    tpu.vector_store %arg7[%c0_13, %c0_14], %20 {strides = array<i32>} : memref<16x128xf32, #tpu.memory_space<vmem>>, vector<16x128xf32>,
    return
  }
  func.func @transform_0(%arg0: i32, %arg1: i32) -> (i32, i32) {
    %c0_i32 = arith.constant 0 : i32
    %c0_i32_0 = arith.constant 0 : i32
    return %arg0, %c0_i32 : i32, i32
  }
  func.func @transform_1(%arg0: i32, %arg1: i32) -> (i32, i32) {
    %c0_i32 = arith.constant 0 : i32
    %c0_i32_0 = arith.constant 0 : i32
    %c0_i32_1 = arith.constant 0 : i32
    return %c0_i32, %c0_i32_0 : i32, i32
  }
  func.func @transform_2(%arg0: i32, %arg1: i32) -> (i32, i32) {
    %c0_i32 = arith.constant 0 : i32
    %c0_i32_0 = arith.constant 0 : i32
    %c0_i32_1 = arith.constant 0 : i32
    return %c0_i32, %c0_i32_0 : i32, i32
  }
  func.func @transform_3(%arg0: i32, %arg1: i32) -> (i32, i32) {
    %c0_i32 = arith.constant 0 : i32
    %c0_i32_0 = arith.constant 0 : i32
    return %c0_i32, %arg1 : i32, i32
  }
  func.func @transform_4(%arg0: i32, %arg1: i32) -> (i32, i32) {
    %c0_i32 = arith.constant 0 : i32
    %c0_i32_0 = arith.constant 0 : i32
    return %c0_i32, %arg1 : i32, i32
  }
  func.func @transform_5(%arg0: i32, %arg1: i32) -> (i32, i32) {
    %c0_i32 = arith.constant 0 : i32
    return %arg0, %arg1 : i32, i32
  }
}

</mosaic_0001>

<bundles_post_ra>
// kernel: embed_fc_forward.1
= control target key start
LH: loop header
LB: loop body
LE: loop exit
PB: predicated region body
PF: predicated region fallthrough
CT: control target
= control target key end

     0   :  { %10 = vsyncpa [#allocation3], 0  ;;  %s539_s0 = inlined_call_operand.vmem [shape: f32[16,128], index: 0, kind: input, shape index: {}]   ;;  %s540_s1 = inlined_call_operand.hbm [shape: bf16[128,128], index: 1, kind: input, shape index: {}]   ;;  %s541_s2 = inlined_call_operand.vmem [shape: f32[1,128], index: 2, kind: input, shape index: {}]   ;;  %s542_s3 = inlined_call_operand.hbm [shape: bf16[128,128], index: 3, kind: input, shape index: {}]   ;;  %s543_s4 = inlined_call_operand.vmem [shape: f32[1,128], index: 4, kind: input, shape index: {}]   ;;  %s544_s5 = inlined_call_operand.hbm [shape: f32[16,128], index: 5, kind: output, shape index: {}]  }
   0x1   :  { %11 = vsyncpa [#allocation6], 0 }
   0x2   :  { %12 = vsyncpa [#allocation4], 0  ;;  %s479_s18 = smov [#allocation2]  }
   0x3   :  { %s20_s19 = sshll.u32 %s479_s18, 4  ;;  %s21_s19 = int_to_ptr.vmem [resolvable:$true] %s20_s19 }
   0x4   :  { %s421_s20 = scalar_lea.vmem %s21_s19, 1024  ;;  %p426_p1 = scmp.lt.s32.totalorder %s21_s19, %s21_s19 }
   0x5   :  { %p422_p0 = scmp.ne.s32.totalorder %s21_s19, %s421_s20  ;;  %p427_p2 = scmp.lt.s32.totalorder %s421_s20, %s421_s20 }
   0x7   :  { %p428_p3 = por %p427_p2, %p426_p1 }
   0x9   :  { %p429_p4 = pnand %p428_p3, %p422_p0 }
   0xb   :  { %432 = shalt.err (!%p429_p4)
}
   0xc   :  { %s480_s21 = smov 64   ;;  %s481_s22 = smov 4  }
   0xd   :  { %26 = dma.hbm_to_vmem [thread:$0]  %s540_s1, 1024, %s21_s19, [#allocation3], %s480_s21, %s480_s21, %s481_s22  }
   0xe   :  { %s482_s25 = smov [#allocation5]  }
   0xf   :  { %s34_s26 = sshll.u32 %s482_s25, 4  ;;  %s35_s26 = int_to_ptr.vmem [resolvable:$true] %s34_s26 }
  0x10   :  { %s441_s27 = scalar_lea.vmem %s35_s26, 1024  ;;  %p446_p6 = scmp.lt.s32.totalorder %s35_s26, %s35_s26 }
  0x11   :  { %p442_p5 = scmp.ne.s32.totalorder %s35_s26, %s441_s27  ;;  %p447_p7 = scmp.lt.s32.totalorder %s441_s27, %s441_s27 }
  0x13   :  { %p448_p8 = por %p447_p7, %p446_p6 }
  0x15   :  { %p449_p9 = pnand %p448_p8, %p442_p5 }
  0x17   :  { %452 = shalt.err (!%p449_p9)
}
  0x18   :  { %40 = dma.hbm_to_vmem [thread:$0]  %s542_s3, 1024, %s35_s26, [#allocation6], %s480_s21, %s480_s21, %s481_s22  }
  0x19   :  { %473 = dma.done.wait [#allocation3], 1024  }
  0x1a   :  { %474 = vsyncadd [#allocation3], 4294966272 }
  0x1b   :  { %475 = dma.done.wait [#allocation6], 1024  }
  0x1c   :  { %476 = vsyncadd [#allocation6], 4294966272  ;;  %v483_v0 = vmov 0.0   ;;  %vm484_vm0 = vmmov 0   ;;  %v393_v1 = vld [vmem:[#allocation2 + $0x38] sm:$0xff]   ;;  %v394_v2 = vld [vmem:[#allocation2 + $0x30] sm:$0xff]  }
  0x1d   :  { %344 = vmatprep.subr.bf16.mxu0 %v483_v0  ;;  %360 = vmatprep.mubr.msk.bf16.mxu0 %vm484_vm0, %v483_v0  ;;  %v395_v3 = vld [vmem:[#allocation2 + $0x28] sm:$0xff]   ;;  %v396_v4 = vld [vmem:[#allocation2 + $0x20] sm:$0xff]   ;;  %v401_v5 = vld [vmem:[#allocation5 + $0x38] sm:$0xff]   ;;  %s485_s9 = smov [#allocation7]  }
  0x1e   :  { %364 = vmatprep.subr.bf16.mxu1 %v483_v0  ;;  %380 = vmatprep.mubr.msk.bf16.mxu1 %vm484_vm0, %v483_v0  ;;  %v397_v6 = vld [vmem:[#allocation2 + $0x18] sm:$0xff]   ;;  %v398_v7 = vld [vmem:[#allocation2 + $0x10] sm:$0xff]   ;;  %v399_v8 = vld [vmem:[#allocation2 + $0x8] sm:$0xff]   ;;  %s295_s10 = sshll.u32 %s485_s9, 4  ;;  %s296_s10 = int_to_ptr.vmem [resolvable:$true] %s295_s10 }
  0x1f   :  { %345 = vmatpush3.bf16.msra.mxu0 %v393_v1  ;;  %365 = vmatpush3.bf16.msra.mxu1 %v401_v5  ;;  %v400_v9 = vld [vmem:[#allocation2] sm:$0xff]   ;;  %v51_v11 = vld [vmem:[%s539_s0 + $0x8] sm:$0xff]  ;;  %v402_v13 = vld [vmem:[#allocation5 + $0x30] sm:$0xff]   ;;  %s453_s11 = scalar_lea.vmem %s296_s10, 256  ;;  %p458_p11 = scmp.lt.s32.totalorder %s296_s10, %s296_s10 }
  0x20   :  { %346 = vmatprep.subr.bf16.mxu0 %v483_v0  ;;  %366 = vmatprep.subr.bf16.mxu1 %v483_v0  ;;  %v50_v10 = vld [vmem:[%s539_s0] sm:$0xff]  ;;  %v403_v14 = vld [vmem:[#allocation5 + $0x28] sm:$0xff]   ;;  %v405_v16 = vld [vmem:[#allocation5 + $0x18] sm:$0xff]   ;;  %p454_p10 = scmp.ne.s32.totalorder %s296_s10, %s453_s11  ;;  %p459_p12 = scmp.lt.s32.totalorder %s453_s11, %s453_s11 }
  0x21   :  { %v52_v12 = vpack.c.bf16 %v51_v11, %v50_v10  ;;  %v404_v15 = vld [vmem:[#allocation5 + $0x20] sm:$0xff]   ;;  %v406_v17 = vld [vmem:[#allocation5 + $0x10] sm:$0xff]   ;;  %v407_v18 = vld [vmem:[#allocation5 + $0x8] sm:$0xff]  }
  0x22   :  { %v408_v19 = vld [vmem:[#allocation5] sm:$0xff]   ;;  %p460_p13 = por %p459_p12, %p458_p11 }
  0x23   :  { %347 = vmatpush3.bf16.msra.mxu0 %v394_v2  ;;  %367 = vmatpush3.bf16.msra.mxu1 %v402_v13  ;;  %v308_v20 = vld [vmem:[%s541_s2] ss:$0 sm:$0xff] }
  0x24   :  { %348 = vmatprep.subr.bf16.mxu0 %v483_v0  ;;  %368 = vmatprep.subr.bf16.mxu1 %v483_v0  ;;  %v317_v38 = vld [vmem:[%s543_s4] ss:$0 sm:$0xff]  ;;  %p461_p0 = pnand %p460_p13, %p454_p10 }
  0x27   :  { %349 = vmatpush3.bf16.msra.mxu0 %v395_v3  ;;  %369 = vmatpush3.bf16.msra.mxu1 %v403_v14 }
  0x28   :  { %350 = vmatprep.subr.bf16.mxu0 %v483_v0  ;;  %370 = vmatprep.subr.bf16.mxu1 %v483_v0 }
  0x2b   :  { %351 = vmatpush3.bf16.msra.mxu0 %v396_v4  ;;  %371 = vmatpush3.bf16.msra.mxu1 %v404_v15 }
  0x2c   :  { %352 = vmatprep.subr.bf16.mxu0 %v483_v0  ;;  %372 = vmatprep.subr.bf16.mxu1 %v483_v0 }
  0x2f   :  { %353 = vmatpush3.bf16.msra.mxu0 %v397_v6  ;;  %373 = vmatpush3.bf16.msra.mxu1 %v405_v16 }
  0x30   :  { %354 = vmatprep.subr.bf16.mxu0 %v483_v0  ;;  %374 = vmatprep.subr.bf16.mxu1 %v483_v0 }
  0x33   :  { %355 = vmatpush3.bf16.msra.mxu0 %v398_v7  ;;  %375 = vmatpush3.bf16.msra.mxu1 %v406_v17 }
  0x34   :  { %356 = vmatprep.subr.bf16.mxu0 %v483_v0  ;;  %376 = vmatprep.subr.bf16.mxu1 %v483_v0 }
  0x37   :  { %357 = vmatpush3.bf16.msra.mxu0 %v399_v8  ;;  %377 = vmatpush3.bf16.msra.mxu1 %v407_v18 }
  0x38   :  { %358 = vmatprep.subr.bf16.mxu0 %v483_v0  ;;  %378 = vmatprep.subr.bf16.mxu1 %v483_v0 }
  0x3b   :  { %359 = vmatpush3.bf16.msra.mxu0 %v400_v9  ;;  %379 = vmatpush3.bf16.msra.mxu1 %v408_v19 }
  0x3e   :  { %361 = vmatmul.mubr.bf16.vlgmr.msra.gmra.mxu0 %v52_v12 }
  0xfe   :  { %v158_v21 = vpop.f32.mrf.mxu0 }
  0xff   :  { %v159_v22 = vadd.f32 %v308_v20, %v158_v21 }
 0x100   :  { %v362_v23 = vpop.f32.mrf.mxu0 }
 0x101   :  { %v167_v24 = vmul.f32 0.70710677, %v159_v22  ;;  %v165_v32 = vmul.f32 0.5, %v159_v22 }
 0x102   :  { %v161_v25 = vpop.f32.mrf.mxu0 }
 0x103   :  { %409 = verf.f32 %v167_v24  ;;  %v162_v26 = vadd.f32 %v308_v20, %v161_v25 }
 0x104   :  { %v363_v27 = vpop.f32.mrf.mxu0 }
 0x105   :  { %v168_v28 = vmul.f32 0.70710677, %v162_v26  ;;  %v166_v33 = vmul.f32 0.5, %v162_v26 }
 0x107   :  { %411 = verf.f32 %v168_v28 }
 0x110   :  { %v410_v29 = vpop.eup %409 }
 0x111   :  { %v171_v30 = vadd.f32 1.0, %v410_v29 }
 0x113   :  { %v173_v35 = vmul.f32 %v171_v30, %v165_v32 }
 0x114   :  { %v412_v31 = vpop.eup %411 }
 0x115   :  { %v172_v34 = vadd.f32 1.0, %v412_v31 }
 0x117   :  { %v174_v36 = vmul.f32 %v172_v34, %v166_v33 }
 0x119   :  { %v175_v37 = vpack.c.bf16 %v174_v36, %v173_v35 }
 0x11b   :  { %381 = vmatmul.mubr.bf16.vlgmr.msra.gmra.mxu1 %v175_v37 }
 0x1db   :  { %v281_v39 = vpop.f32.mrf.mxu1 }
 0x1dc   :  { %v282_v40 = vadd.f32 %v317_v38, %v281_v39 }
 0x1dd   :  { %v382_v41 = vpop.f32.mrf.mxu1 }
 0x1de   :  { %288 = vst [vmem:[#allocation7] sm:$0xff] %v282_v40 }
 0x1df   :  { %v284_v42 = vpop.f32.mrf.mxu1 }
 0x1e0   :  { %v285_v43 = vadd.f32 %v317_v38, %v284_v42 }
 0x1e1   :  { %v383_v44 = vpop.f32.mrf.mxu1 }
 0x1e2   :  { %289 = vst [vmem:[#allocation7 + $0x8] sm:$0xff] %v285_v43 }
 0x1e3   :  { %464 = shalt.err (!%p461_p0)
}
 0x1e4   :  { %s486_s12 = smov 128   ;;  %s487_s4 = smov 8  }
 0x1e5   :  { %301 = dma.vmem_to_hbm [thread:$0]  %s296_s10, 256, %s544_s5, [#allocation4], %s486_s12, %s486_s12, %s487_s4  }
 0x1e6   :  { %477 = dma.done.wait [#allocation4], 256  }
 0x1e7   :  { %478 = vsyncadd [#allocation4], 4294967040 }
 0x1e8   :  { %305 = vsyncpa [#allocation3], 1 }
 0x1e9   :  { %306 = vsyncpa [#allocation6], 1 }
 0x1ea   :  { %307 = vsyncpa [#allocation4], 1 }

</bundles_post_ra>
